<compile_context>
chip_gen: v6e
topology: v6e:2x2x1
jax: 0.10.0
libtpu: 0.0.40
codegen_flags: <defaults>
</compile_context>

<pallas_src>
import functools

import jax
import jax.numpy as jnp
from jax.experimental import pallas as pl
from jax.experimental.pallas import tpu as pltpu


def _round_up(x, m):
    return ((x + m - 1) // m) * m


def _default_block_b():
    """Per-generation batch-tile default (rows).

    v5e (16 MiB scoped-VMEM default): 4096 rows of f32@in_dim=256 is 4 MiB/step,
    8 MiB double-buffered -> safe and ~88% of roofline.  v6e: 4096 is ~89%.
    v7x (64 MiB physical VMEM, 3.2 TB/s): bigger steps amortize the ~0.35 us
    per-step overhead, so prefer 8192 rows (8 MiB/step, 16 MiB double-buffered,
    within the 32 MiB scoped default).
    """
    try:
        info = pltpu.get_tpu_info()
        vmem = int(getattr(info, "vmem_capacity_bytes", 0) or 0)
        if vmem and vmem <= (64 << 20):     # v7x-class part
            return 8192
    except Exception:
        pass
    return 4096


def _ncf_folded_kernel(a_ref, c_ref, e_ref, wa_ref, wc_ref, we_ref, b_ref, o_ref):
    """sigmoid(x @ w_eff + b_eff) for one batch tile.

    a/c/e_ref : (tb, Da)/(tb, Dc)/(tb, De)  streamed slabs, native dtype
    wa/wc/we  : (Da, 1)/(Dc, 1)/(De, 1)     VMEM-resident folded-weight columns
    b_ref     : (1,) SMEM                    folded bias
    o_ref     : (tb, 1)                      rating
    """
    # TODO(synk): nn.Dropout(attn_dropout) omitted (eval mode == identity).
    # Upcast in vregs (not in HBM); contract against (D, 1) columns so the big
    # streamed tiles are never transposed.
    a = a_ref[...].astype(jnp.float32)
    c = c_ref[...].astype(jnp.float32)
    e = e_ref[...].astype(jnp.float32)
    acc = jnp.dot(a, wa_ref[...], preferred_element_type=jnp.float32)
    acc = acc + jnp.dot(c, wc_ref[...], preferred_element_type=jnp.float32)
    acc = acc + jnp.dot(e, we_ref[...], preferred_element_type=jnp.float32)
    o_ref[...] = jax.nn.sigmoid(acc + b_ref[0])


def fold_params(params):
    """Collapse the three Linear layers (no interleaved nonlinearity) into one."""
    w1, b1, w2, b2, w3, b3 = params
    hi = jax.lax.Precision.HIGHEST
    w_eff = jnp.dot(jnp.dot(w1, w2, precision=hi), w3, precision=hi)            # (in_dim, 1)
    b_eff = jnp.dot(jnp.dot(b1, w2, precision=hi) + b2, w3, precision=hi) + b3  # (1, 1)
    return w_eff.astype(jnp.float32), b_eff.astype(jnp.float32)


@functools.partial(jax.jit, static_argnames=("block_b",))
def _movie_ncf_forward_impl(A_movie, C_movie, e_movie, w_eff, b_eff, *, block_b):
    B = A_movie.shape[0]
    # Reshapes are layout no-ops on contiguous data; torch.cat is elided and
    # there is no wrapper-side pad or astype (no extra HBM copies).
    a = A_movie.reshape(B, -1)
    c = C_movie.reshape(B, -1)
    e = e_movie
    Da, Dc, De = a.shape[1], c.shape[1], e.shape[1]
    in_dim = Da + Dc + De
    assert w_eff.shape == (in_dim, 1)

    # Folded-weight column slices, one per input slab (kept VMEM-resident).
    wa = w_eff[:Da]
    wc = w_eff[Da:Da + Dc]
    we = w_eff[Da + Dc:]
    b_smem = b_eff.reshape(1).astype(jnp.float32)

    # Batch tile: multiple of 128 rows.  No input padding -- grid = cdiv(B, tb);
    # Pallas pads out-of-bounds reads and masks out-of-bounds writes of the
    # ragged final block.
    tb = min(block_b, _round_up(B, 128))
    halves = _round_up(pl.cdiv(B, 2), 128)
    if halves < tb:
        # Guarantee >= 2 grid steps so v7x's second TensorCore isn't idle.
        tb = halves
    grid = (pl.cdiv(B, tb),)

    in_bytes = B * (Da * a.dtype.itemsize
                    + Dc * c.dtype.itemsize
                    + De * e.dtype.itemsize)

    out = pl.pallas_call(
        _ncf_folded_kernel,
        out_shape=jax.ShapeDtypeStruct((B, 1), jnp.float32),
        grid=grid,
        in_specs=[
            pl.BlockSpec((tb, Da), lambda i: (i, 0)),   # a slab (streamed)
            pl.BlockSpec((tb, Dc), lambda i: (i, 0)),   # c slab (streamed)
            pl.BlockSpec((tb, De), lambda i: (i, 0)),   # e slab (streamed)
            pl.BlockSpec((Da, 1), lambda i: (0, 0)),    # wa column (resident)
            pl.BlockSpec((Dc, 1), lambda i: (0, 0)),    # wc column (resident)
            pl.BlockSpec((De, 1), lambda i: (0, 0)),    # we column (resident)
            pl.BlockSpec(memory_space=pltpu.MemorySpace.SMEM),  # folded bias
        ],
        out_specs=pl.BlockSpec((tb, 1), lambda i: (i, 0)),
        compiler_params=pltpu.CompilerParams(
            dimension_semantics=("parallel",)),
        cost_estimate=pl.CostEstimate(
            flops=2 * B * in_dim,
            transcendentals=B,
            bytes_accessed=in_bytes + in_dim * 4 + B * 4),
    )(a, c, e, wa, wc, we, b_smem)

    return out  # (B, 1)


def movie_ncf_forward(A_movie, C_movie, e_movie, w_eff, b_eff, *, block_b=None):
    """Pallas implementation of Movie_NCF.forward (eval mode)."""
    if block_b is None:
        block_b = _default_block_b()
    return _movie_ncf_forward_impl(A_movie, C_movie, e_movie, w_eff, b_eff,
                                   block_b=block_b)


def init_params(key, in_dim):
    """Deterministic xavier-normal-ish init, shapes matching the nn.Sequential.

    Weights are stored as (in_features, out_features), i.e. the transpose of
    PyTorch's nn.Linear.weight, so the forward computes x @ W + b.
    """
    k1, k2, k3 = jax.random.split(key, 3)

    def xavier(k, fan_in, fan_out):
        std = jnp.sqrt(2.0 / (fan_in + fan_out))
        return jax.random.normal(k, (fan_in, fan_out), jnp.float32) * std

    w1 = xavier(k1, in_dim, 256)
    b1 = jnp.zeros((1, 256), jnp.float32)
    w2 = xavier(k2, 256, 128)
    b2 = jnp.zeros((1, 128), jnp.float32)
    w3 = xavier(k3, 128, 1)
    b3 = jnp.zeros((1, 1), jnp.float32)
    return (w1, b1, w2, b2, w3, b3)


if __name__ == "__main__":
    # Small shapes consistent with the module.
    latent_dim = 32
    num_aspects = 4
    num_aspects_specific = 3
    batch = 8
    in_dim = latent_dim * (num_aspects + num_aspects_specific + 1)  # 256

    key = jax.random.PRNGKey(0)
    ka, kc, ke, kp = jax.random.split(key, 4)

    # forward() reshapes A_movie with num_aspects_specific and C_movie with
    # num_aspects, so build inputs with those aspect counts.
    A_movie = jax.random.normal(
        ka, (batch, num_aspects_specific, latent_dim), jnp.float32)
    C_movie = jax.random.normal(kc, (batch, num_aspects, latent_dim), jnp.float32)
    e_movie = jax.random.normal(ke, (batch, latent_dim), jnp.float32)

    params = init_params(kp, in_dim)
    w_eff, b_eff = fold_params(params)   # precomputed once, outside the kernel

    # --- f32 streaming path (matches the PyTorch module's default dtype) ---
    rating = movie_ncf_forward(A_movie, C_movie, e_movie, w_eff, b_eff)
    jax.block_until_ready(rating)

    # Reference: the original (unfolded) 3-layer MLP in plain JAX, high precision.
    vec = jnp.concatenate(
        [A_movie.reshape(batch, -1), C_movie.reshape(batch, -1), e_movie], axis=1)
    w1, b1, w2, b2, w3, b3 = params
    hi = jax.lax.Precision.HIGHEST
    h1 = jnp.dot(vec, w1, precision=hi) + b1
    h2 = jnp.dot(h1, w2, precision=hi) + b2
    ref = jax.nn.sigmoid(jnp.dot(h2, w3, precision=hi) + b3)

    assert rating.shape == (batch, 1)
    # Folding the linears reassociates FP ops; observed agreement is ~1e-5.
    assert jnp.allclose(rating, ref, atol=1e-3, rtol=1e-3), (
        float(jnp.max(jnp.abs(rating - ref))))

    # --- bf16 streaming path (halves HBM bytes; f32 accumulation in-kernel) ---
    A_bf, C_bf, e_bf = (A_movie.astype(jnp.bfloat16),
                        C_movie.astype(jnp.bfloat16),
                        e_movie.astype(jnp.bfloat16))
    rating_bf = movie_ncf_forward(A_bf, C_bf, e_bf, w_eff, b_eff)
    jax.block_until_ready(rating_bf)

    vec_bf = jnp.concatenate(
        [A_bf.reshape(batch, -1).astype(jnp.float32),
         C_bf.reshape(batch, -1).astype(jnp.float32),
         e_bf.astype(jnp.float32)], axis=1)
    ref_bf = jax.nn.sigmoid(jnp.dot(vec_bf, w_eff, precision=hi) + b_eff)
    assert rating_bf.shape == (batch, 1)
    assert jnp.allclose(rating_bf, ref_bf, atol=1e-3, rtol=1e-3), (
        float(jnp.max(jnp.abs(rating_bf - ref_bf))))

    print("KERNEL_OK")
</pallas_src>

<mosaic_0001>
module attributes {stable_mosaic.version = 11 : i64} {
  func.func @_ncf_folded_kernel(%arg0: i32, %arg1: memref<128x96xf32, #tpu.memory_space<vmem>>, %arg2: memref<128x128xf32, #tpu.memory_space<vmem>>, %arg3: memref<128x32xf32, #tpu.memory_space<vmem>>, %arg4: memref<96x1xf32, #tpu.memory_space<vmem>>, %arg5: memref<128x1xf32, #tpu.memory_space<vmem>>, %arg6: memref<32x1xf32, #tpu.memory_space<vmem>>, %arg7: memref<1xf32, #tpu.memory_space<smem>>, %arg8: memref<128x1xf32, #tpu.memory_space<vmem>>) attributes {dimension_semantics = [#tpu.dimension_semantics<parallel>], iteration_bounds = array<i64: 1>, scalar_prefetch = 0 : i64, scratch_operands = 0 : i64, tpu.core_type = #tpu.core_type<tc>, window_params = [{transform_indices = @transform_0, window_bounds = array<i64: 128, 96>}, {transform_indices = @transform_1, window_bounds = array<i64: 128, 128>}, {transform_indices = @transform_2, window_bounds = array<i64: 128, 32>}, {pipeline_mode = #tpu.pipeline_mode<synchronous>, transform_indices = @transform_3, window_bounds = array<i64: 96, 1>}, {pipeline_mode = #tpu.pipeline_mode<synchronous>, transform_indices = @transform_4, window_bounds = array<i64: 128, 1>}, {pipeline_mode = #tpu.pipeline_mode<synchronous>, transform_indices = @transform_5, window_bounds = array<i64: 32, 1>}, {transform_indices = @transform_6, window_bounds = array<i64: 1>}, {transform_indices = @transform_7, window_bounds = array<i64: 128, 1>}]} {
    %c0 = arith.constant 0 : index
    %c0_0 = arith.constant 0 : index
    %0 = vector.load %arg1[%c0, %c0_0] : memref<128x96xf32, #tpu.memory_space<vmem>>, vector<128x96xf32>
    %c0_1 = arith.constant 0 : index
    %c0_2 = arith.constant 0 : index
    %1 = vector.load %arg2[%c0_1, %c0_2] : memref<128x128xf32, #tpu.memory_space<vmem>>, vector<128x128xf32>
    %c0_3 = arith.constant 0 : index
    %c0_4 = arith.constant 0 : index
    %2 = vector.load %arg3[%c0_3, %c0_4] : memref<128x32xf32, #tpu.memory_space<vmem>>, vector<128x32xf32>
    %c0_5 = arith.constant 0 : index
    %c0_6 = arith.constant 0 : index
    %3 = vector.load %arg4[%c0_5, %c0_6] : memref<96x1xf32, #tpu.memory_space<vmem>>, vector<96x1xf32>
    %cst = arith.constant dense<0.000000e+00> : vector<128x1xf32>
    %4 = tpu.matmul %0, %3, %cst {dimension_numbers = #tpu.dot_dimension_numbers<[1], [0], [0], [1], [0, 0, 1, 1], [], []>} : vector<128x96xf32>, vector<96x1xf32>, vector<128x1xf32> -> vector<128x1xf32>
    %c0_7 = arith.constant 0 : index
    %c0_8 = arith.constant 0 : index
    %5 = vector.load %arg5[%c0_7, %c0_8] : memref<128x1xf32, #tpu.memory_space<vmem>>, vector<128x1xf32>
    %cst_9 = arith.constant dense<0.000000e+00> : vector<128x1xf32>
    %6 = tpu.matmul %1, %5, %cst_9 {dimension_numbers = #tpu.dot_dimension_numbers<[1], [0], [0], [1], [0, 0, 1, 1], [], []>} : vector<128x128xf32>, vector<128x1xf32>, vector<128x1xf32> -> vector<128x1xf32>
    %7 = arith.addf %4, %6 : vector<128x1xf32>
    %c0_10 = arith.constant 0 : index
    %c0_11 = arith.constant 0 : index
    %8 = vector.load %arg6[%c0_10, %c0_11] : memref<32x1xf32, #tpu.memory_space<vmem>>, vector<32x1xf32>
    %cst_12 = arith.constant dense<0.000000e+00> : vector<128x1xf32>
    %9 = tpu.matmul %2, %8, %cst_12 {dimension_numbers = #tpu.dot_dimension_numbers<[1], [0], [0], [1], [0, 0, 1, 1], [], []>} : vector<128x32xf32>, vector<32x1xf32>, vector<128x1xf32> -> vector<128x1xf32>
    %10 = arith.addf %7, %9 : vector<128x1xf32>
    %c0_13 = arith.constant 0 : index
    %11 = memref.load %arg7[%c0_13] : memref<1xf32, #tpu.memory_space<smem>>
    %12 = vector.broadcast %11 : f32 to vector<128x1xf32>
    %13 = arith.addf %10, %12 : vector<128x1xf32>
    %14 = arith.negf %13 : vector<128x1xf32>
    %15 = math.exp %14 : vector<128x1xf32>
    %cst_14 = arith.constant 1.000000e+00 : f32
    %16 = vector.broadcast %cst_14 : f32 to vector<128x1xf32>
    %17 = arith.addf %16, %15 : vector<128x1xf32>
    %18 = arith.divf %16, %17 : vector<128x1xf32>
    %c0_15 = arith.constant 0 : index
    %c0_16 = arith.constant 0 : index
    %19 = vector.load %arg8[%c0_15, %c0_16] : memref<128x1xf32, #tpu.memory_space<vmem>>, vector<128x1xf32>
    tpu.vector_store %arg8[%c0_15, %c0_16], %18 {strides = array<i32>} : memref<128x1xf32, #tpu.memory_space<vmem>>, vector<128x1xf32>,
    return
  }
  func.func @transform_0(%arg0: i32) -> (i32, i32) {
    %c0_i32 = arith.constant 0 : i32
    %c0_i32_0 = arith.constant 0 : i32
    return %arg0, %c0_i32 : i32, i32
  }
  func.func @transform_1(%arg0: i32) -> (i32, i32) {
    %c0_i32 = arith.constant 0 : i32
    %c0_i32_0 = arith.constant 0 : i32
    return %arg0, %c0_i32 : i32, i32
  }
  func.func @transform_2(%arg0: i32) -> (i32, i32) {
    %c0_i32 = arith.constant 0 : i32
    %c0_i32_0 = arith.constant 0 : i32
    return %arg0, %c0_i32 : i32, i32
  }
  func.func @transform_3(%arg0: i32) -> (i32, i32) {
    %c0_i32 = arith.constant 0 : i32
    %c0_i32_0 = arith.constant 0 : i32
    %c0_i32_1 = arith.constant 0 : i32
    return %c0_i32, %c0_i32_0 : i32, i32
  }
  func.func @transform_4(%arg0: i32) -> (i32, i32) {
    %c0_i32 = arith.constant 0 : i32
    %c0_i32_0 = arith.constant 0 : i32
    %c0_i32_1 = arith.constant 0 : i32
    return %c0_i32, %c0_i32_0 : i32, i32
  }
  func.func @transform_5(%arg0: i32) -> (i32, i32) {
    %c0_i32 = arith.constant 0 : i32
    %c0_i32_0 = arith.constant 0 : i32
    %c0_i32_1 = arith.constant 0 : i32
    return %c0_i32, %c0_i32_0 : i32, i32
  }
  func.func @transform_6(%arg0: i32) -> i32 {
    %c0_i32 = arith.constant 0 : i32
    %c0_i32_0 = arith.constant 0 : i32
    return %c0_i32 : i32
  }
  func.func @transform_7(%arg0: i32) -> (i32, i32) {
    %c0_i32 = arith.constant 0 : i32
    %c0_i32_0 = arith.constant 0 : i32
    return %arg0, %c0_i32 : i32, i32
  }
}

</mosaic_0001>

<bundles_post_ra>
// kernel: _movie_ncf_forward_impl.1
= control target key start
LH: loop header
LB: loop body
LE: loop exit
PB: predicated region body
PF: predicated region fallthrough
CT: control target
= control target key end

     0   :  { %vm248_vm0 = vcmask 785408   ;;  %vm446_vm1 = vcmask 261120   ;;  %vm770_vm2 = vcmask 7168   ;;  %s1613_s0 = inlined_call_operand.vmem [shape: f32[8,96], index: 0, kind: input, shape index: {}]   ;;  %s1614_s1 = inlined_call_operand.vmem [shape: f32[8,128], index: 1, kind: input, shape index: {}]   ;;  %s1615_s2 = inlined_call_operand.vmem [shape: f32[8,32], index: 2, kind: input, shape index: {}]   ;;  %s1616_s3 = inlined_call_operand.vmem [shape: f32[96,1], index: 3, kind: input, shape index: {}]   ;;  %s1617_s4 = inlined_call_operand.vmem [shape: f32[128,1], index: 4, kind: input, shape index: {}]   ;;  %s1618_s5 = inlined_call_operand.vmem [shape: f32[32,1], index: 5, kind: input, shape index: {}]   ;;  %s1619_s6 = inlined_call_operand.<no memory space> [shape: f32[1], index: 6, kind: input, shape index: {}]   ;;  %s1620_s7 = inlined_call_operand.vmem [shape: f32[8,1], index: 7, kind: output, shape index: {}]  }
   0x1   :  { %v102_v0 = vld [vmem:[%s1617_s4 + $0x78] sm:$0xff]  ;;  %v101_v2 = vld [vmem:[%s1617_s4 + $0x70] sm:$0xff]  ;;  %v100_v4 = vld [vmem:[%s1617_s4 + $0x68] sm:$0xff] }
   0x2   :  { %v1226_v1 = vld [vmem:[%s1616_s3 + $0x58] sm:$0xff]  ;;  %956 = vmatprep.subr.mxu0 %v102_v0  ;;  %v1235_v3 = vld [vmem:[%s1616_s3 + $0x50] sm:$0xff]  ;;  %v1244_v5 = vld [vmem:[%s1616_s3 + $0x48] sm:$0xff] }
   0x3   :  { %1092 = vmatprep.subr.mxu1 %v1226_v1  ;;  %957 = vmatpush3.msra.mxu0 %v102_v0  ;;  %v99_v6 = vld [vmem:[%s1617_s4 + $0x60] sm:$0xff]  ;;  %v98_v8 = vld [vmem:[%s1617_s4 + $0x58] sm:$0xff]  ;;  %v97_v10 = vld [vmem:[%s1617_s4 + $0x50] sm:$0xff] }
   0x4   :  { %1104 = vmatpush3.msra.mxu1 %v1226_v1  ;;  %958 = vmatprep.subr.mxu0 %v101_v2  ;;  %v1254_v7 = vld [vmem:[%s1616_s3 + $0x40] sm:$0xff]  ;;  %v1264_v9 = vld [vmem:[%s1616_s3 + $0x38] sm:$0xff]  ;;  %v1274_v11 = vld [vmem:[%s1616_s3 + $0x30] sm:$0xff] }
   0x5   :  { %1093 = vmatprep.subr.mxu1 %v1235_v3  ;;  %959 = vmatpush3.msra.mxu0 %v101_v2  ;;  %v96_v12 = vld [vmem:[%s1617_s4 + $0x48] sm:$0xff]  ;;  %v95_v14 = vld [vmem:[%s1617_s4 + $0x40] sm:$0xff]  ;;  %v94_v16 = vld [vmem:[%s1617_s4 + $0x38] sm:$0xff] }
   0x6   :  { %1105 = vmatpush3.msra.mxu1 %v1235_v3  ;;  %960 = vmatprep.subr.mxu0 %v100_v4  ;;  %v1284_v13 = vld [vmem:[%s1616_s3 + $0x28] sm:$0xff]  ;;  %v1294_v15 = vld [vmem:[%s1616_s3 + $0x20] sm:$0xff]  ;;  %v1304_v17 = vld [vmem:[%s1616_s3 + $0x18] sm:$0xff] }
   0x7   :  { %1094 = vmatprep.subr.mxu1 %v1244_v5  ;;  %961 = vmatpush3.msra.mxu0 %v100_v4  ;;  %v93_v18 = vld [vmem:[%s1617_s4 + $0x30] sm:$0xff]  ;;  %v92_v20 = vld [vmem:[%s1617_s4 + $0x28] sm:$0xff]  ;;  %v91_v22 = vld [vmem:[%s1617_s4 + $0x20] sm:$0xff] }
   0x8   :  { %1106 = vmatpush3.msra.mxu1 %v1244_v5  ;;  %962 = vmatprep.subr.mxu0 %v99_v6  ;;  %v1314_v19 = vld [vmem:[%s1616_s3 + $0x10] sm:$0xff]  ;;  %v1324_v21 = vld [vmem:[%s1616_s3 + $0x8] sm:$0xff]  ;;  %v1334_v23 = vld [vmem:[%s1616_s3] sm:$0xff] }
   0x9   :  { %1095 = vmatprep.subr.mxu1 %v1254_v7  ;;  %963 = vmatpush3.msra.mxu0 %v99_v6  ;;  %v33_v24 = vld [vmem:[%s1613_s0 + $0x30] sm:$0xff]  ;;  %v90_v25 = vld [vmem:[%s1617_s4 + $0x18] sm:$0xff]  ;;  %v35_v29 = vld [vmem:[%s1613_s0 + $0x40] sm:$0xff] }
   0xa   :  { %1107 = vmatpush3.msra.mxu1 %v1254_v7  ;;  %964 = vmatprep.subr.mxu0 %v98_v8  ;;  %v34_v26 = vld [vmem:[%s1613_s0 + $0x38] sm:$0xff]  ;;  %v89_v27 = vld [vmem:[%s1617_s4 + $0x10] sm:$0xff]  ;;  %v88_v30 = vld [vmem:[%s1617_s4 + $0x8] sm:$0xff] }
   0xb   :  { %1096 = vmatprep.subr.mxu1 %v1264_v9  ;;  %965 = vmatpush3.msra.mxu0 %v98_v8  ;;  %v445_v28 = vld [vmem:[%s1618_s5 + $0x18] sm:$0xff]  ;;  %v36_v31 = vld [vmem:[%s1613_s0 + $0x48] sm:$0xff]  ;;  %v87_v32 = vld [vmem:[%s1617_s4] sm:$0xff] }
   0xc   :  { %1108 = vmatpush3.msra.mxu1 %v1264_v9  ;;  %966 = vmatprep.subr.mxu0 %v97_v10  ;;  %v43_v33 = vld [vmem:[%s1614_s1] sm:$0xff]  ;;  %v37_v34 = vld [vmem:[%s1613_s0 + $0x50] sm:$0xff]  ;;  %v44_v36 = vld [vmem:[%s1614_s1 + $0x8] sm:$0xff] }
   0xd   :  { %1097 = vmatprep.subr.mxu1 %v1274_v11  ;;  %967 = vmatpush3.msra.mxu0 %v97_v10  ;;  %v444_v35 = vld [vmem:[%s1618_s5 + $0x10] sm:$0xff]  ;;  %v38_v37 = vld [vmem:[%s1613_s0 + $0x58] sm:$0xff]  ;;  %v39_v39 = vld [vmem:[%s1613_s0 + $0x60] sm:$0xff] }
   0xe   :  { %1109 = vmatpush3.msra.mxu1 %v1274_v11  ;;  %968 = vmatprep.subr.mxu0 %v96_v12  ;;  %v45_v38 = vld [vmem:[%s1614_s1 + $0x10] sm:$0xff]  ;;  %v46_v40 = vld [vmem:[%s1614_s1 + $0x18] sm:$0xff]  ;;  %v40_v41 = vld [vmem:[%s1613_s0 + $0x68] sm:$0xff] }
   0xf   :  { %1098 = vmatprep.subr.mxu1 %v1284_v13  ;;  %969 = vmatpush3.msra.mxu0 %v96_v12  ;;  %v443_v42 = vld [vmem:[%s1618_s5 + $0x8] sm:$0xff]  ;;  %v47_v43 = vld [vmem:[%s1614_s1 + $0x20] sm:$0xff]  ;;  %v41_v44 = vld [vmem:[%s1613_s0 + $0x70] sm:$0xff] }
  0x10   :  { %1110 = vmatpush3.msra.mxu1 %v1284_v13  ;;  %970 = vmatprep.subr.mxu0 %v95_v14  ;;  %v48_v45 = vld [vmem:[%s1614_s1 + $0x28] sm:$0xff]  ;;  %v42_v46 = vld [vmem:[%s1613_s0 + $0x78] sm:$0xff]  ;;  %v442_v47 = vld [vmem:[%s1618_s5] sm:$0xff] }
  0x11   :  { %1099 = vmatprep.subr.mxu1 %v1294_v15  ;;  %971 = vmatpush3.msra.mxu0 %v95_v14  ;;  %v49_v48 = vld [vmem:[%s1614_s1 + $0x30] sm:$0xff]  ;;  %v59_v49 = vld [vmem:[%s1615_s2] sm:$0xff]  ;;  %v50_v50 = vld [vmem:[%s1614_s1 + $0x38] sm:$0xff] }
  0x12   :  { %1111 = vmatpush3.msra.mxu1 %v1294_v15  ;;  %972 = vmatprep.subr.mxu0 %v94_v16  ;;  %v60_v51 = vld [vmem:[%s1615_s2 + $0x8] sm:$0xff]  ;;  %v51_v52 = vld [vmem:[%s1614_s1 + $0x40] sm:$0xff]  ;;  %v61_v53 = vld [vmem:[%s1615_s2 + $0x10] sm:$0xff] }
  0x13   :  { %1100 = vmatprep.subr.mxu1 %v1304_v17  ;;  %973 = vmatpush3.msra.mxu0 %v94_v16  ;;  %v52_v54 = vld [vmem:[%s1614_s1 + $0x48] sm:$0xff]  ;;  %v62_v55 = vld [vmem:[%s1615_s2 + $0x18] sm:$0xff]  ;;  %v53_v56 = vld [vmem:[%s1614_s1 + $0x50] sm:$0xff] }
  0x14   :  { %1112 = vmatpush3.msra.mxu1 %v1304_v17  ;;  %974 = vmatprep.subr.mxu0 %v93_v18  ;;  %v63_v57 = vld [vmem:[%s1615_s2 + $0x20] sm:$0xff]  ;;  %v54_v58 = vld [vmem:[%s1614_s1 + $0x58] sm:$0xff]  ;;  %v64_v59 = vld [vmem:[%s1615_s2 + $0x28] sm:$0xff] }
  0x15   :  { %1101 = vmatprep.subr.mxu1 %v1314_v19  ;;  %975 = vmatpush3.msra.mxu0 %v93_v18  ;;  %v55_v60 = vld [vmem:[%s1614_s1 + $0x60] sm:$0xff]  ;;  %v65_v61 = vld [vmem:[%s1615_s2 + $0x30] sm:$0xff]  ;;  %v56_v62 = vld [vmem:[%s1614_s1 + $0x68] sm:$0xff] }
  0x16   :  { %1113 = vmatpush3.msra.mxu1 %v1314_v19  ;;  %976 = vmatprep.subr.mxu0 %v92_v20  ;;  %v66_v63 = vld [vmem:[%s1615_s2 + $0x38] sm:$0xff]  ;;  %v57_v0 = vld [vmem:[%s1614_s1 + $0x70] sm:$0xff]  ;;  %v27_v4 = vld [vmem:[%s1613_s0] sm:$0xff] }
  0x17   :  { %1102 = vmatprep.subr.mxu1 %v1324_v21  ;;  %977 = vmatpush3.msra.mxu0 %v92_v20  ;;  %v58_v2 = vld [vmem:[%s1614_s1 + $0x78] sm:$0xff]  ;;  %v28_v6 = vld [vmem:[%s1613_s0 + $0x8] sm:$0xff]  ;;  %v29_v8 = vld [vmem:[%s1613_s0 + $0x10] sm:$0xff] }
  0x18   :  { %1114 = vmatpush3.msra.mxu1 %v1324_v21  ;;  %978 = vmatprep.subr.mxu0 %v91_v22  ;;  %v30_v10 = vld [vmem:[%s1613_s0 + $0x18] sm:$0xff]  ;;  %v31_v12 = vld [vmem:[%s1613_s0 + $0x20] sm:$0xff]  ;;  %v32_v14 = vld [vmem:[%s1613_s0 + $0x28] sm:$0xff] }
  0x19   :  { %1103 = vmatprep.subr.mxu1 %v1334_v23  ;;  %979 = vmatpush3.msra.mxu0 %v91_v22 }
  0x1a   :  { %1115 = vmatpush3.msra.mxu1 %v1334_v23  ;;  %1045 = vmatprep.mubr.msk.f32.mxu1 %vm248_vm0, %v33_v24 }
  0x1b   :  { %980 = vmatprep.subr.mxu0 %v90_v25  ;;  %1046 = vmatmul.mubr.msk.f32.vlgmr.msra.gmra.mxu1 %vm248_vm0, %v34_v26 }
  0x1c   :  { %981 = vmatpush3.msra.mxu0 %v90_v25  ;;  %1060 = vmatprep.subr.mxu1 %v445_v28 }
  0x1d   :  { %982 = vmatprep.subr.mxu0 %v89_v27  ;;  %1048 = vmatprep.mubr.msk.f32.mxu1 %vm248_vm0, %v35_v29 }
  0x1e   :  { %983 = vmatpush3.msra.mxu0 %v89_v27  ;;  %1061 = vmatpush3.msra.mxu1 %v445_v28 }
  0x1f   :  { %984 = vmatprep.subr.mxu0 %v88_v30  ;;  %1049 = vmatmul.mubr.msk.f32.gmra.mxu1 %vm248_vm0, %v36_v31 }
  0x20   :  { %985 = vmatpush3.msra.mxu0 %v88_v30  ;;  %988 = vmatprep.mubr.f32.mxu0 %v43_v33 }
  0x21   :  { %986 = vmatprep.subr.mxu0 %v87_v32  ;;  %1051 = vmatprep.mubr.msk.f32.mxu1 %vm248_vm0, %v37_v34 }
  0x22   :  { %987 = vmatpush3.msra.mxu0 %v87_v32  ;;  %1062 = vmatprep.subr.mxu1 %v444_v35 }
  0x23   :  { %989 = vmatmul.mubr.f32.vlgmr.msra.gmra.mxu0 %v44_v36  ;;  %1012 = vmatprep.subr.mxu0 %v1226_v1 }
  0x24   :  { %1052 = vmatmul.mubr.msk.f32.gmra.mxu1 %vm248_vm0, %v38_v37  ;;  %1013 = vmatpush3.msra.mxu0 %v1226_v1  ;;  %v67_v1 = vld [vmem:[%s1615_s2 + $0x40] sm:$0xff] }
  0x25   :  { %1063 = vmatpush3.msra.mxu1 %v444_v35  ;;  %991 = vmatprep.mubr.f32.mxu0 %v45_v38 }
  0x26   :  { %1014 = vmatprep.subr.mxu0 %v1235_v3  ;;  %1054 = vmatprep.mubr.msk.f32.mxu1 %vm248_vm0, %v39_v39 }
  0x27   :  { %992 = vmatmul.mubr.f32.gmra.mxu0 %v46_v40  ;;  %1064 = vmatprep.subr.mxu1 %v443_v42 }
  0x28   :  { %1015 = vmatpush3.msra.mxu0 %v1235_v3  ;;  %1055 = vmatmul.mubr.msk.f32.gmra.mxu1 %vm248_vm0, %v40_v41  ;;  %v68_v3 = vld [vmem:[%s1615_s2 + $0x48] sm:$0xff] }
  0x29   :  { %1016 = vmatprep.subr.mxu0 %v1244_v5  ;;  %1065 = vmatpush3.msra.mxu1 %v443_v42 }
  0x2a   :  { %994 = vmatprep.mubr.f32.mxu0 %v47_v43  ;;  %1017 = vmatpush3.msra.mxu0 %v1244_v5  ;;  %v69_v5 = vld [vmem:[%s1615_s2 + $0x50] sm:$0xff] }
  0x2b   :  { %1057 = vmatprep.mubr.msk.f32.mxu1 %vm248_vm0, %v41_v44  ;;  %995 = vmatmul.mubr.f32.gmra.mxu0 %v48_v45 }
  0x2c   :  { %1018 = vmatprep.subr.mxu0 %v1254_v7  ;;  %1058 = vmatmul.mubr.msk.f32.gmra.mxu1 %vm248_vm0, %v42_v46 }
  0x2d   :  { %1019 = vmatpush3.msra.mxu0 %v1254_v7  ;;  %1066 = vmatprep.subr.mxu1 %v442_v47  ;;  %v70_v7 = vld [vmem:[%s1615_s2 + $0x58] sm:$0xff] }
  0x2e   :  { %997 = vmatprep.mubr.f32.mxu0 %v49_v48  ;;  %1067 = vmatpush3.msra.mxu1 %v442_v47  ;;  %v1583_v47 = vstv %s1619_s6 }
  0x2f   :  { %1020 = vmatprep.subr.mxu0 %v1264_v9  ;;  %1068 = vmatprep.mubr.msk.f32.mxu1 %vm446_vm1, %v59_v49 }
  0x30   :  { %998 = vmatmul.mubr.f32.gmra.mxu0 %v50_v50  ;;  %1069 = vmatmul.mubr.msk.f32.vlgmr.msra.gmra.mxu1 %vm446_vm1, %v60_v51 }
  0x31   :  { %1021 = vmatpush3.msra.mxu0 %v1264_v9  ;;  %1000 = vmatprep.mubr.f32.mxu0 %v51_v52  ;;  %v71_v9 = vld [vmem:[%s1615_s2 + $0x60] sm:$0xff] }
  0x32   :  { %1022 = vmatprep.subr.mxu0 %v1274_v11  ;;  %1071 = vmatprep.mubr.msk.f32.mxu1 %vm446_vm1, %v61_v53 }
  0x33   :  { %1023 = vmatpush3.msra.mxu0 %v1274_v11  ;;  %v72_v11 = vld [vmem:[%s1615_s2 + $0x68] sm:$0xff] }
  0x34   :  { %1001 = vmatmul.mubr.f32.gmra.mxu0 %v52_v54  ;;  %1024 = vmatprep.subr.mxu0 %v1284_v13 }
  0x35   :  { %1072 = vmatmul.mubr.msk.f32.gmra.mxu1 %vm446_vm1, %v62_v55  ;;  %1025 = vmatpush3.msra.mxu0 %v1284_v13  ;;  %v73_v13 = vld [vmem:[%s1615_s2 + $0x70] sm:$0xff] }
  0x36   :  { %1003 = vmatprep.mubr.f32.mxu0 %v53_v56  ;;  %1026 = vmatprep.subr.mxu0 %v1294_v15 }
  0x37   :  { %1074 = vmatprep.mubr.msk.f32.mxu1 %vm446_vm1, %v63_v57  ;;  %1027 = vmatpush3.msra.mxu0 %v1294_v15  ;;  %v74_v15 = vld [vmem:[%s1615_s2 + $0x78] sm:$0xff] }
  0x38   :  { %1004 = vmatmul.mubr.f32.gmra.mxu0 %v54_v58  ;;  %1028 = vmatprep.subr.mxu0 %v1304_v17 }
  0x39   :  { %1075 = vmatmul.mubr.msk.f32.gmra.mxu1 %vm446_vm1, %v64_v59  ;;  %1006 = vmatprep.mubr.f32.mxu0 %v55_v60 }
  0x3a   :  { %1029 = vmatpush3.msra.mxu0 %v1304_v17  ;;  %1077 = vmatprep.mubr.msk.f32.mxu1 %vm446_vm1, %v65_v61 }
  0x3b   :  { %1030 = vmatprep.subr.mxu0 %v1314_v19 }
  0x3c   :  { %1007 = vmatmul.mubr.f32.gmra.mxu0 %v56_v62 }
  0x3d   :  { %1078 = vmatmul.mubr.msk.f32.gmra.mxu1 %vm446_vm1, %v66_v63  ;;  %1031 = vmatpush3.msra.mxu0 %v1314_v19 }
  0x3e   :  { %1009 = vmatprep.mubr.f32.mxu0 %v57_v0  ;;  %1032 = vmatprep.subr.mxu0 %v1324_v21 }
  0x3f   :  { %1080 = vmatprep.mubr.msk.f32.mxu1 %vm446_vm1, %v67_v1  ;;  %1033 = vmatpush3.msra.mxu0 %v1324_v21 }
  0x40   :  { %1010 = vmatmul.mubr.f32.gmra.mxu0 %v58_v2  ;;  %1034 = vmatprep.subr.mxu0 %v1334_v23 }
  0x41   :  { %1081 = vmatmul.mubr.msk.f32.gmra.mxu1 %vm446_vm1, %v68_v3  ;;  %1035 = vmatpush3.msra.mxu0 %v1334_v23 }
  0x42   :  { %1036 = vmatprep.mubr.msk.f32.mxu0 %vm248_vm0, %v27_v4  ;;  %1083 = vmatprep.mubr.msk.f32.mxu1 %vm446_vm1, %v69_v5 }
  0x44   :  { %1037 = vmatmul.mubr.msk.f32.vlgmr.msra.gmra.mxu0 %vm248_vm0, %v28_v6 }
  0x45   :  { %1084 = vmatmul.mubr.msk.f32.gmra.mxu1 %vm446_vm1, %v70_v7  ;;  %1039 = vmatprep.mubr.msk.f32.mxu0 %vm248_vm0, %v29_v8 }
  0x46   :  { %1086 = vmatprep.mubr.msk.f32.mxu1 %vm446_vm1, %v71_v9 }
  0x48   :  { %1040 = vmatmul.mubr.msk.f32.gmra.mxu0 %vm248_vm0, %v30_v10 }
  0x49   :  { %1087 = vmatmul.mubr.msk.f32.gmra.mxu1 %vm446_vm1, %v72_v11  ;;  %1042 = vmatprep.mubr.msk.f32.mxu0 %vm248_vm0, %v31_v12 }
  0x4a   :  { %1089 = vmatprep.mubr.msk.f32.mxu1 %vm446_vm1, %v73_v13 }
  0x4c   :  { %1043 = vmatmul.mubr.msk.f32.gmra.mxu0 %vm248_vm0, %v32_v14 }
  0x4d   :  { %1090 = vmatmul.mubr.msk.f32.gmra.mxu1 %vm446_vm1, %v74_v15 }
  0xdb   :  { %v1047_v16 = vpop.f32.mrf.mxu1 }
  0xdd   :  { %v393_v17 = vpop.f32.mrf.mxu1 }
  0xdf   :  { %v1050_v18 = vpop.f32.mrf.mxu1 }
  0xe1   :  { %v403_v19 = vpop.f32.mrf.mxu1 }
  0xe3   :  { %v990_v20 = vpop.f32.mrf.mxu0 }
  0xe4   :  { %v1053_v21 = vpop.f32.mrf.mxu1 }
  0xe5   :  { %v169_v22 = vpop.f32.mrf.mxu0 }
  0xe6   :  { %v413_v23 = vpop.f32.mrf.mxu1 }
  0xe7   :  { %v1564_v24 = vpop.f32.mrf.mxu0 }
  0xe8   :  { %v1056_v25 = vpop.f32.mrf.mxu1 }
  0xe9   :  { %v1566_v26 = vpop.f32.mrf.mxu0 }
  0xea   :  { %v423_v27 = vpop.f32.mrf.mxu1 }
  0xeb   :  { %v1568_v28 = vpop.f32.mrf.mxu0 }
  0xec   :  { %v1059_v29 = vpop.f32.mrf.mxu1 }
  0xed   :  { %v1570_v30 = vpop.f32.mrf.mxu0 }
  0xee   :  { %v433_v31 = vpop.f32.mrf.mxu1 }
  0xf0   :  { %v999_v32 = vpop.f32.mrf.mxu0  ;;  %v1070_v33 = vpop.f32.mrf.mxu1 }
  0xf1   :  { %v399_v44 = vadd.f32 %v1047_v16, %v999_v32 }
  0xf2   :  { %v199_v34 = vpop.f32.mrf.mxu0  ;;  %v561_v35 = vpop.f32.mrf.mxu1 }
  0xf3   :  { %v394_v48 = vadd.f32 %v393_v17, %v199_v34 }
  0xf4   :  { %v1002_v36 = vpop.f32.mrf.mxu0 }
  0xf5   :  { %v1572_v37 = vpop.f32.mrf.mxu1  ;;  %v409_v52 = vadd.f32 %v1050_v18, %v1002_v36 }
  0xf6   :  { %v209_v38 = vpop.f32.mrf.mxu0 }
  0xf7   :  { %v1574_v39 = vpop.f32.mrf.mxu1  ;;  %v404_v57 = vadd.f32 %v403_v19, %v209_v38 }
  0xf8   :  { %v1005_v40 = vpop.f32.mrf.mxu0 }
  0xf9   :  { %v1576_v41 = vpop.f32.mrf.mxu1  ;;  %v419_v62 = vadd.f32 %v1053_v21, %v1005_v40 }
  0xfa   :  { %v219_v42 = vpop.f32.mrf.mxu0 }
  0xfb   :  { %v1578_v43 = vpop.f32.mrf.mxu1  ;;  %v414_v4 = vadd.f32 %v413_v23, %v219_v42 }
  0xfc   :  { %v1008_v45 = vpop.f32.mrf.mxu0 }
  0xfd   :  { %v1079_v46 = vpop.f32.mrf.mxu1  ;;  %v429_v5 = vadd.f32 %v1056_v25, %v1008_v45 }
  0xfe   :  { %v647_v49 = vadd.f32 %v1079_v46, %v399_v44  ;;  %v229_v50 = vpop.f32.mrf.mxu0 }
  0xff   :  { %v591_v51 = vpop.f32.mrf.mxu1  ;;  %v424_v12 = vadd.f32 %v423_v27, %v229_v50 }
 0x100   :  { %v665_v53 = vadd.f32 %v1583_v47, %v647_v49  ;;  %v646_v54 = vadd.f32 %v591_v51, %v394_v48  ;;  %v1011_v55 = vpop.f32.mrf.mxu0 }
 0x101   :  { %v1082_v56 = vpop.f32.mrf.mxu1  ;;  %v439_v13 = vadd.f32 %v1059_v29, %v1011_v55 }
 0x102   :  { %v867_v58 = vmul.f32 -1.442695, %v665_v53  ;;  %v664_v59 = vadd.f32 %v1583_v47, %v646_v54  ;;  %v649_v60 = vadd.f32 %v1082_v56, %v409_v52  ;;  %v239_v61 = vpop.f32.mrf.mxu0 }
 0x103   :  { %v601_v63 = vpop.f32.mrf.mxu1  ;;  %v434_v23 = vadd.f32 %v433_v31, %v239_v61 }
 0x104   :  { %1116 = vpow2.f32 %v867_v58  ;;  %v866_v0 = vmul.f32 -1.442695, %v664_v59  ;;  %v667_v1 = vadd.f32 %v1583_v47, %v649_v60  ;;  %v648_v2 = vadd.f32 %v601_v63, %v404_v57  ;;  %v1038_v3 = vpop.f32.mrf.mxu0 }
 0x105   :  { %v369_v6 = vadd.f32 %v1038_v3, %v990_v20  ;;  %v1085_v7 = vpop.f32.mrf.mxu1 }
 0x106   :  { %1118 = vpow2.f32 %v866_v0  ;;  %v869_v8 = vmul.f32 -1.442695, %v667_v1  ;;  %v666_v9 = vadd.f32 %v1583_v47, %v648_v2  ;;  %v651_v10 = vadd.f32 %v1085_v7, %v419_v62  ;;  %v363_v11 = vpop.f32.mrf.mxu0 }
 0x107   :  { %v641_v14 = vadd.f32 %v1070_v33, %v369_v6  ;;  %v364_v15 = vadd.f32 %v363_v11, %v169_v22  ;;  %v611_v16 = vpop.f32.mrf.mxu1 }
 0x108   :  { %1120 = vpow2.f32 %v869_v8  ;;  %v868_v17 = vmul.f32 -1.442695, %v666_v9  ;;  %v669_v18 = vadd.f32 %v1583_v47, %v651_v10  ;;  %v650_v19 = vadd.f32 %v611_v16, %v414_v4  ;;  %v1041_v21 = vpop.f32.mrf.mxu0 }
 0x109   :  { %v659_v20 = vadd.f32 %v1583_v47, %v641_v14  ;;  %v640_v25 = vadd.f32 %v561_v35, %v364_v15  ;;  %v379_v32 = vadd.f32 %v1041_v21, %v1564_v24  ;;  %v1088_v34 = vpop.f32.mrf.mxu1 }
 0x10a   :  { %1122 = vpow2.f32 %v868_v17  ;;  %v871_v36 = vmul.f32 -1.442695, %v669_v18  ;;  %v668_v27 = vadd.f32 %v1583_v47, %v650_v19  ;;  %v653_v29 = vadd.f32 %v1088_v34, %v429_v5  ;;  %v373_v22 = vpop.f32.mrf.mxu0 }
 0x10b   :  { %v861_v33 = vmul.f32 -1.442695, %v659_v20  ;;  %v658_v38 = vadd.f32 %v1583_v47, %v640_v25  ;;  %v643_v40 = vadd.f32 %v1572_v37, %v379_v32  ;;  %v374_v42 = vadd.f32 %v373_v22, %v1566_v26  ;;  %v621_v31 = vpop.f32.mrf.mxu1 }
 0x10c   :  { %1124 = vpow2.f32 %v871_v36  ;;  %v870_v44 = vmul.f32 -1.442695, %v668_v27  ;;  %v671_v35 = vadd.f32 %v1583_v47, %v653_v29  ;;  %v652_v24 = vadd.f32 %v621_v31, %v424_v12  ;;  %v1044_v45 = vpop.f32.mrf.mxu0 }
 0x10d   :  { %1126 = vpow2.f32 %v861_v33  ;;  %v860_v46 = vmul.f32 -1.442695, %v658_v38  ;;  %v661_v48 = vadd.f32 %v1583_v47, %v643_v40  ;;  %v642_v49 = vadd.f32 %v1574_v39, %v374_v42  ;;  %v1091_v50 = vpop.f32.mrf.mxu1 }
 0x10e   :  { %1128 = vpow2.f32 %v870_v44  ;;  %v873_v51 = vmul.f32 -1.442695, %v671_v35  ;;  %v670_v37 = vadd.f32 %v1583_v47, %v652_v24  ;;  %v389_v26 = vadd.f32 %v1044_v45, %v1568_v28  ;;  %v383_v52 = vpop.f32.mrf.mxu0 }
 0x10f   :  { %1130 = vpow2.f32 %v860_v46  ;;  %v863_v53 = vmul.f32 -1.442695, %v661_v48  ;;  %v660_v54 = vadd.f32 %v1583_v47, %v642_v49  ;;  %v655_v55 = vadd.f32 %v1091_v50, %v439_v13  ;;  %v631_v56 = vpop.f32.mrf.mxu1 }
 0x110   :  { %1132 = vpow2.f32 %v873_v51  ;;  %v872_v57 = vmul.f32 -1.442695, %v670_v37  ;;  %v645_v58 = vadd.f32 %v1576_v41, %v389_v26  ;;  %v384_v39 = vadd.f32 %v383_v52, %v1570_v30 }
 0x111   :  { %v1117_v59 = vpop.eup %1116  ;;  %1134 = vpow2.f32 %v863_v53  ;;  %v862_v60 = vmul.f32 -1.442695, %v660_v54  ;;  %v673_v61 = vadd.f32 %v1583_v47, %v655_v55  ;;  %v654_v62 = vadd.f32 %v631_v56, %v434_v23 }
 0x112   :  { %v729_v28 = vadd.f32 1.0, %v1117_v59  ;;  %1136 = vpow2.f32 %v872_v57  ;;  %v663_v63 = vadd.f32 %v1583_v47, %v645_v58  ;;  %v644_v0 = vadd.f32 %v1578_v43, %v384_v39 }
 0x113   :  { %v1119_v1 = vpop.eup %1118  ;;  %1138 = vpow2.f32 %v862_v60  ;;  %v875_v2 = vmul.f32 -1.442695, %v673_v61  ;;  %v672_v3 = vadd.f32 %v1583_v47, %v654_v62 }
 0x114   :  { %1140 = vrcp.f32 %v729_v28  ;;  %v728_v41 = vadd.f32 1.0, %v1119_v1  ;;  %v865_v30 = vmul.f32 -1.442695, %v663_v63  ;;  %v662_v4 = vadd.f32 %v1583_v47, %v644_v0 }
 0x115   :  { %v1121_v5 = vpop.eup %1120  ;;  %1142 = vpow2.f32 %v875_v2  ;;  %v874_v9 = vmul.f32 -1.442695, %v672_v3 }
 0x116   :  { %1144 = vrcp.f32 %v728_v41  ;;  %v731_v6 = vadd.f32 1.0, %v1121_v5  ;;  %v864_v7 = vmul.f32 -1.442695, %v662_v4 }
 0x117   :  { %v1123_v8 = vpop.eup %1122  ;;  %1146 = vpow2.f32 %v865_v30 }
 0x118   :  { %1148 = vrcp.f32 %v731_v6  ;;  %v730_v43 = vadd.f32 1.0, %v1123_v8 }
 0x119   :  { %v1125_v10 = vpop.eup %1124  ;;  %1150 = vpow2.f32 %v864_v7 }
 0x11a   :  { %v1127_v11 = vpop.eup %1126  ;;  %1152 = vrcp.f32 %v730_v43  ;;  %v733_v12 = vadd.f32 1.0, %v1125_v10 }
 0x11b   :  { %v1129_v13 = vpop.eup %1128  ;;  %v723_v14 = vadd.f32 1.0, %v1127_v11  ;;  %1154 = vpow2.f32 %v874_v9 }
 0x11c   :  { %v1131_v15 = vpop.eup %1130  ;;  %1156 = vrcp.f32 %v733_v12  ;;  %v732_v47 = vadd.f32 1.0, %v1129_v13 }
 0x11d   :  { %v1133_v16 = vpop.eup %1132  ;;  %1158 = vrcp.f32 %v723_v14  ;;  %v722_v17 = vadd.f32 1.0, %v1131_v15 }
 0x11e   :  { %v1135_v18 = vpop.eup %1134  ;;  %1160 = vrcp.f32 %v732_v47  ;;  %v735_v19 = vadd.f32 1.0, %v1133_v16 }
 0x11f   :  { %v1137_v21 = vpop.eup %1136  ;;  %1162 = vrcp.f32 %v722_v17  ;;  %v725_v23 = vadd.f32 1.0, %v1135_v18 }
 0x120   :  { %v1139_v20 = vpop.eup %1138  ;;  %1164 = vrcp.f32 %v735_v19  ;;  %v734_v25 = vadd.f32 1.0, %v1137_v21 }
 0x121   :  { %v1141_v32 = vpop.eup %1140  ;;  %1166 = vrcp.f32 %v725_v23  ;;  %v724_v34 = vadd.f32 1.0, %v1139_v20 }
 0x122   :  { %v1143_v36 = vpop.eup %1142  ;;  %1168 = vrcp.f32 %v734_v25 }
 0x123   :  { %v1145_v27 = vpop.eup %1144  ;;  %1170 = vrcp.f32 %v724_v34  ;;  %v737_v29 = vadd.f32 1.0, %v1143_v36 }
 0x124   :  { %v1147_v22 = vpop.eup %1146 }
 0x125   :  { %v1149_v33 = vpop.eup %1148  ;;  %v727_v38 = vadd.f32 1.0, %v1147_v22  ;;  %1172 = vrcp.f32 %v737_v29 }
 0x126   :  { %v1151_v40 = vpop.eup %1150 }
 0x127   :  { %v1153_v42 = vpop.eup %1152  ;;  %1174 = vrcp.f32 %v727_v38  ;;  %v726_v31 = vadd.f32 1.0, %v1151_v40 }
 0x128   :  { %v1155_v44 = vpop.eup %1154 }
 0x129   :  { %v1157_v35 = vpop.eup %1156  ;;  %1176 = vrcp.f32 %v726_v31  ;;  %v736_v24 = vadd.f32 1.0, %v1155_v44 }
 0x12a   :  { %v1159_v45 = vpop.eup %1158 }
 0x12b   :  { %v1161_v46 = vpop.eup %1160  ;;  %1178 = vrcp.f32 %v736_v24 }
 0x12c   :  { %v1163_v48 = vpop.eup %1162 }
 0x12d   :  { %v1165_v49 = vpop.eup %1164  ;;  %771 = vst.msk [vmem:[#allocation3] sm:$0xff] %vm770_vm2, %v1163_v48 }
 0x12e   :  { %v1167_v50 = vpop.eup %1166 }
 0x12f   :  { %v1169_v51 = vpop.eup %1168 }
 0x130   :  { %v1171_v37 = vpop.eup %1170 }
 0x132   :  { %v1173_v26 = vpop.eup %1172 }
 0x134   :  { %v1175_v52 = vpop.eup %1174  ;;  %v817_v53 = vld [vmem:[#allocation3] sm:$0xff] }
 0x135   :  { %818 = vst [vmem:[%s1620_s7] sm:$0xff] %v817_v53 }
 0x136   :  { %v1177_v54 = vpop.eup %1176 }
 0x138   :  { %v1179_v55 = vpop.eup %1178 }

</bundles_post_ra>
